<compile_context>
chip_gen: v7x
topology: tpu7x:2x2x1
jax: 0.10.0
libtpu: 0.0.40
codegen_flags: <defaults>
</compile_context>

<pallas_src>
import jax
import jax.numpy as jnp
from jax.experimental import pallas as pl
from jax.experimental.pallas import tpu as pltpu


def _fused_pad_affine_kernel(params_ref, x_ref, noise_ref, out_ref):
    """out = zero_pad(x, 1) * a + b + noise, with exactly one full-tile store.

    params_ref (SMEM): [a, b] with a = w_conv*w_lin, b = b_conv*w_lin + b_lin.
    x_ref     : (TB, H, W)      unpadded input block
    noise_ref : (TB, H+2, W+2)  noise block
    out_ref   : (TB, H+2, W+2)  output block
    """
    # Hoist the two SMEM scalar reads once per grid step.
    a = params_ref[0]
    b = params_ref[1]

    x = x_ref[...]
    tb, h, w = x.shape
    dt = x.dtype

    # Build the zero-padded input as a value (the concatenated zeros ARE the pad
    # ring), so the output needs only a single aligned, unmasked full-tile store.
    zero_col = jnp.zeros((tb, h, 1), dt)
    x_cols = jnp.concatenate([zero_col, x, zero_col], axis=2)       # (TB, H,   W+2)
    zero_row = jnp.zeros((tb, 1, w + 2), dt)
    x_pad = jnp.concatenate([zero_row, x_cols, zero_row], axis=1)   # (TB, H+2, W+2)

    out_ref[...] = a * x_pad + b + noise_ref[...]


def model_forward(x_nchw, w_conv, b_conv, w_lin, b_lin, noise):
    """x_nchw: (N, 1, H, W) float32. Returns (N, 1, H+2, W+2) float32."""
    N, C, H, W = x_nchw.shape
    Hp, Wp = H + 2, W + 2
    NC = N * C

    # Fold conv(1x1) + Linear(1,1) into a single affine (scalar math in wrapper).
    a = (w_conv.reshape(()) * w_lin.reshape(())).astype(jnp.float32)
    b = (b_conv.reshape(()) * w_lin.reshape(()) + b_lin.reshape(())).astype(jnp.float32)
    params = jnp.stack([a, b])

    # Collapse N, C into one leading dim (contiguous reshape, no data movement).
    x3 = x_nchw.reshape(NC, H, W).astype(jnp.float32)
    noise3 = noise.reshape(NC, Hp, Wp).astype(jnp.float32)

    # --- Block-size / grid selection --------------------------------------------
    # Per-image streamed bytes: x (H*W) + noise (Hp*Wp) + out (Hp*Wp), all f32.
    bytes_per_image = 4 * (H * W + 2 * Hp * Wp)
    target_block_bytes = 2 * 1024 * 1024   # ~2 MiB/block: per-step overhead amortized,
                                           # 2x double-buffered still << 32 MiB (v7x scoped VMEM)
    tb = int(max(1, min(target_block_bytes // bytes_per_image,   # VMEM / DMA-size budget
                        pl.cdiv(NC, 2))))                        # keep >=2 steps for v7x megacore
    while NC % tb != 0:                    # avoid ragged trailing blocks
        tb -= 1
    grid = (NC // tb,)

    out3 = pl.pallas_call(
        _fused_pad_affine_kernel,
        out_shape=jax.ShapeDtypeStruct((NC, Hp, Wp), jnp.float32),
        grid=grid,
        in_specs=[
            pl.BlockSpec(memory_space=pltpu.MemorySpace.SMEM),      # [a, b] scalars
            pl.BlockSpec((tb, H, W), lambda i: (i, 0, 0)),          # x (unpadded)
            pl.BlockSpec((tb, Hp, Wp), lambda i: (i, 0, 0)),        # noise
        ],
        out_specs=pl.BlockSpec((tb, Hp, Wp), lambda i: (i, 0, 0)),
        compiler_params=pltpu.CompilerParams(
            dimension_semantics=("parallel",)),
    )(params, x3, noise3)

    return out3.reshape(N, C, Hp, Wp)


if __name__ == "__main__":
    key = jax.random.PRNGKey(0)
    k_x, k_wc, k_bc, k_wl, k_bl, k_noise = jax.random.split(key, 6)

    # Shapes consistent with the module: Conv2d(1,1,...) forces C == 1; the spec
    # drives the model with 64x64 spatial input.
    N, C, H, W = 2, 1, 64, 64
    x1 = jax.random.normal(k_x, (N, C, H, W), dtype=jnp.float32)

    # Parameter shapes from Conv2d(1,1,1) and Linear(1,1).
    w_conv = jax.random.normal(k_wc, (1, 1, 1, 1), dtype=jnp.float32) * 0.5
    b_conv = jax.random.normal(k_bc, (1,), dtype=jnp.float32) * 0.1
    w_lin = jax.random.normal(k_wl, (1, 1), dtype=jnp.float32) * 0.5
    b_lin = jax.random.normal(k_bl, (1,), dtype=jnp.float32) * 0.1

    # other = torch.randn(v1.shape): v1 has shape (N, 1, H+2, W+2).
    noise = jax.random.normal(k_noise, (N, C, H + 2, W + 2), dtype=jnp.float32)

    out = model_forward(x1, w_conv, b_conv, w_lin, b_lin, noise)
    out = jax.block_until_ready(out)

    # Pure-JAX reference of the fused semantics.
    a = w_conv.reshape(()) * w_lin.reshape(())
    b = b_conv.reshape(()) * w_lin.reshape(()) + b_lin.reshape(())
    ref = jnp.pad(x1, ((0, 0), (0, 0), (1, 1), (1, 1))) * a + b + noise

    assert out.shape == (N, C, H + 2, W + 2)
    assert jnp.allclose(out, ref, atol=1e-5, rtol=1e-5)

    print("KERNEL_OK")
</pallas_src>

<mosaic_0001>
module attributes {stable_mosaic.version = 11 : i64} {
  func.func @_fused_pad_affine_kernel(%arg0: i32, %arg1: memref<2xf32, #tpu.memory_space<smem>>, %arg2: memref<1x64x64xf32, #tpu.memory_space<vmem>>, %arg3: memref<1x66x66xf32, #tpu.memory_space<vmem>>, %arg4: memref<1x66x66xf32, #tpu.memory_space<vmem>>) attributes {dimension_semantics = [#tpu.dimension_semantics<parallel>], iteration_bounds = array<i64: 2>, scalar_prefetch = 0 : i64, scratch_operands = 0 : i64, tpu.core_type = #tpu.core_type<tc>, window_params = [{transform_indices = @transform_0, window_bounds = array<i64: 2>}, {transform_indices = @transform_1, window_bounds = array<i64: 1, 64, 64>}, {transform_indices = @transform_2, window_bounds = array<i64: 1, 66, 66>}, {transform_indices = @transform_3, window_bounds = array<i64: 1, 66, 66>}]} {
    %c0 = arith.constant 0 : index
    %0 = memref.load %arg1[%c0] : memref<2xf32, #tpu.memory_space<smem>>
    %c1 = arith.constant 1 : index
    %1 = memref.load %arg1[%c1] : memref<2xf32, #tpu.memory_space<smem>>
    %c0_0 = arith.constant 0 : index
    %c0_1 = arith.constant 0 : index
    %c0_2 = arith.constant 0 : index
    %2 = vector.load %arg2[%c0_0, %c0_1, %c0_2] : memref<1x64x64xf32, #tpu.memory_space<vmem>>, vector<1x64x64xf32>
    %cst = arith.constant 0.000000e+00 : f32
    %3 = vector.broadcast %cst : f32 to vector<1x64x1xf32>
    %4 = tpu.concatenate %3, %2, %3 in 2 : vector<1x64x1xf32>, vector<1x64x64xf32>, vector<1x64x1xf32> -> vector<1x64x66xf32>
    %cst_3 = arith.constant 0.000000e+00 : f32
    %5 = vector.broadcast %cst_3 : f32 to vector<1x1x66xf32>
    %6 = tpu.concatenate %5, %4, %5 in 1 : vector<1x1x66xf32>, vector<1x64x66xf32>, vector<1x1x66xf32> -> vector<1x66x66xf32>
    %7 = vector.broadcast %0 : f32 to vector<1x66x66xf32>
    %8 = arith.mulf %7, %6 : vector<1x66x66xf32>
    %9 = vector.broadcast %1 : f32 to vector<1x66x66xf32>
    %10 = arith.addf %8, %9 : vector<1x66x66xf32>
    %c0_4 = arith.constant 0 : index
    %c0_5 = arith.constant 0 : index
    %c0_6 = arith.constant 0 : index
    %11 = vector.load %arg3[%c0_4, %c0_5, %c0_6] : memref<1x66x66xf32, #tpu.memory_space<vmem>>, vector<1x66x66xf32>
    %12 = arith.addf %10, %11 : vector<1x66x66xf32>
    %c0_7 = arith.constant 0 : index
    %c0_8 = arith.constant 0 : index
    %c0_9 = arith.constant 0 : index
    %13 = vector.load %arg4[%c0_7, %c0_8, %c0_9] : memref<1x66x66xf32, #tpu.memory_space<vmem>>, vector<1x66x66xf32>
    tpu.vector_store %arg4[%c0_7, %c0_8, %c0_9], %12 {strides = array<i32>} : memref<1x66x66xf32, #tpu.memory_space<vmem>>, vector<1x66x66xf32>,
    return
  }
  func.func @transform_0(%arg0: i32) -> i32 {
    %c0_i32 = arith.constant 0 : i32
    %c0_i32_0 = arith.constant 0 : i32
    return %c0_i32 : i32
  }
  func.func @transform_1(%arg0: i32) -> (i32, i32, i32) {
    %c0_i32 = arith.constant 0 : i32
    %c0_i32_0 = arith.constant 0 : i32
    %c0_i32_1 = arith.constant 0 : i32
    return %arg0, %c0_i32, %c0_i32_0 : i32, i32, i32
  }
  func.func @transform_2(%arg0: i32) -> (i32, i32, i32) {
    %c0_i32 = arith.constant 0 : i32
    %c0_i32_0 = arith.constant 0 : i32
    %c0_i32_1 = arith.constant 0 : i32
    return %arg0, %c0_i32, %c0_i32_0 : i32, i32, i32
  }
  func.func @transform_3(%arg0: i32) -> (i32, i32, i32) {
    %c0_i32 = arith.constant 0 : i32
    %c0_i32_0 = arith.constant 0 : i32
    %c0_i32_1 = arith.constant 0 : i32
    return %arg0, %c0_i32, %c0_i32_0 : i32, i32, i32
  }
}

</mosaic_0001>

<bundles_post_ra>
// kernel: tpu_custom_call.1
= control target key start
LH: loop header
LB: loop body
LE: loop exit
PB: predicated region body
PF: predicated region fallthrough
CT: control target
= control target key end

     0   :  { %8 = vsyncpa [#allocation3], 0  ;;  %s513_s12 = smov 0   ;;  %s628_s0 = inlined_call_operand.vmem [shape: f32[2], index: 0, kind: input, shape index: {}]   ;;  %s629_s1 = inlined_call_operand.vmem [shape: f32[2,64,64], index: 1, kind: input, shape index: {}]   ;;  %s630_s2 = inlined_call_operand.vmem [shape: f32[2,66,66], index: 2, kind: input, shape index: {}]   ;;  %s631_s3 = inlined_call_operand.vmem [shape: f32[2,66,66], index: 3, kind: output, shape index: {}]  }
   0x1 LB: > { %s428_s13 = sadd.s32 4294967295, %s489_s12   ;;  %p430_p0 = scmp.ge.s32.totalorder %s489_s12, 1  ;;  %s489_s12 = sphi %s513_s12, %s14_s12  }
   0x2   : > { %p118_p1 = scmp.lt.s32.totalorder %s489_s12, 3  ;;  %s131_s16 = sshll.u32 %s628_s0, 4  ;;  %s132_s16 = int_to_ptr.vmem [resolvable:$true] %s131_s16 }
   0x3   : > { %p452_p3 = scmp.eq.s32.totalorder %s428_s13, 0  ;;  %s464_s18 = scalar_lea.vmem %s132_s16, 16 }
   0x4   : > { %p524_p2 = pnand %p430_p0, %p118_p1  ;;  %p465_p6 = scmp.ne.s32.totalorder %s132_s16, %s464_s18 }
   0x5   : > { %p472_p10 = scmp.lt.s32.totalorder %s132_s16, %s132_s16  ;;  %p473_p11 = scmp.lt.s32.totalorder %s464_s18, %s464_s18 }
   0x6   : > { %p448_p4 = pneg %p524_p2 }
   0x7   : > { %p474_p12 = por %p473_p11, %p472_p10 }
   0x8   : > { %p449_p5 = pnand %p452_p3, %p448_p4 }
   0xa   : > { %p466_p7 = pneg %p449_p5 }
   0xc   : > { %p467_p8 = pnand %p466_p7, %p465_p6 }
   0xe   : > { %p468_p9 = pneg %p467_p8 }
  0x10   : > { %p475_p13 = pnand %p474_p12, %p468_p9 }
  0x12   : > { %478 = shalt.err (!%p475_p13)
}
  0x13   : > { %s491_s19 = smov [#allocation2]   ;;  %160 = sbr.rel (%p524_p2) target bundleno = 176 (0xb0), region = 32 }
  0x14   : > { %451 = dma.vmem_to_smem (!%p449_p5), %s132_s16, 16, %s491_s19, [#allocation3]  }
  0x1a   : > { %484 = dma.done.wait (%p452_p3), [#allocation3], 16  }
  0x1b   : > { %486 = vsyncadd (%p452_p3), [#allocation3], 4294967280 }
  0x1c   : > { %166 = sfence }
  0x1d   : > { %p190_p0 = scmp.lt.s32.totalorder %s428_s13, 1  ;;  %s492_s24 = smov 1   ;;  %vm247_vm0 = vcmask 7168   ;;  %vm256_vm1 = vcmask 531456   ;;  %vm273_vm2 = vcmask 1040384   ;;  %vm338_vm3 = vcmask 539648  }
  0x1e   : > { %s205_s25 = sld [smem:[#allocation2]]  ;;  %s439_s26 = sld [smem:[#allocation2 + $0x1]]  ;;  %vm347_vm4 = vcmask 533504  }
  0x1f   : > { %s634_s13 = smov (!%p190_p0, %s428_s13), 1 }
  0x20   : > { %s442_s20 = sshll.u32 %s634_s13, 6  ;;  %s443_s27 = smul.u32 72, %s634_s13 }
  0x21   : > { %s194_s23 = scalar_lea.vmem %s629_s1, %s442_s20 }
  0x22   : > { %v209_v0 = vld [vmem:[%s194_s23 + $0x10] sm:$0xff]  ;;  %v207_v1 = vld [vmem:[%s194_s23] sm:$0xff]  ;;  %v210_v2 = vld [vmem:[%s194_s23 + $0x18] sm:$0xff]  ;;  %s550_s30 = scalar_lea.vmem %s630_s2, %s443_s27  ;;  %s566_s6 = scalar_lea.vmem %s631_s3, %s443_s27 }
  0x23   : > { %227 = vrot.lane.b32.xlu1 %v209_v0, %s492_s24  ;;  %223 = vrot.lane.b32.xlu0 %v207_v1, %s492_s24  ;;  %v208_v3 = vld [vmem:[%s194_s23 + $0x8] sm:$0xff]  ;;  %v211_v5 = vld [vmem:[%s194_s23 + $0x20] sm:$0xff] }
  0x24   : > { %v212_v4 = vld [vmem:[%s194_s23 + $0x28] sm:$0xff]  ;;  %v214_v6 = vld [vmem:[%s194_s23 + $0x38] sm:$0xff]  ;;  %v213_v7 = vld [vmem:[%s194_s23 + $0x30] sm:$0xff]  ;;  %v545_v13 = vstv %s205_s25 }
  0x25   : > { %v553_v18 = vstv %s439_s26  ;;  %v320_v26 = vld [vmem:[%s550_s30] sm:$0xff]  ;;  %v323_v40 = vld [vmem:[%s550_s30 + $0x18] sm:$0xff]  ;;  %v321_v41 = vld [vmem:[%s550_s30 + $0x8] sm:$0xff] }
  0x26   : > { %v322_v42 = vld [vmem:[%s550_s30 + $0x10] sm:$0xff] }
  0x27   : > { %229 = vrot.lane.b32.xlu1 %v210_v2, %s492_s24  ;;  %225 = vrot.lane.b32.xlu0 %v208_v3, %s492_s24  ;;  %v324_v2 = vld [vmem:[%s550_s30 + $0x20] sm:$0xff]  ;;  %v325_v3 = vld [vmem:[%s550_s30 + $0x28] sm:$0xff] }
  0x2b   : > { %233 = vrot.lane.b32.xlu1 %v212_v4, %s492_s24  ;;  %231 = vrot.lane.b32.xlu0 %v211_v5, %s492_s24 }
  0x2f   : > { %237 = vrot.lane.b32.xlu1 %v214_v6, %s492_s24  ;;  %235 = vrot.lane.b32.xlu0 %v213_v7, %s492_s24 }
  0x95   : > { %v228_v8 = vpop.permute.xlu1 %227  ;;  %v224_v9 = vpop.permute.xlu0 %223 }
  0x96   : > { %v250_v10 = vsel %vm247_vm0, 0.0, %v228_v8  ;;  %v248_v11 = vsel %vm247_vm0, 0.0, %v224_v9 }
  0x97   : > { %v257_v12 = vsel %vm256_vm1, %v248_v11, 0.0  ;;  %v259_v15 = vsel %vm256_vm1, %v250_v10, 0.0  ;;  %v328_v11 = vld [vmem:[%s550_s30 + $0x40] sm:$0x3] }
  0x98   : > { %v274_v14 = vrot.slane %v257_v12, 7  ;;  %v277_v25 = vrot.slane %v259_v15, 7  ;;  %v326_v12 = vld [vmem:[%s550_s30 + $0x30] sm:$0xff] }
  0x99   : > { %v230_v16 = vpop.permute.xlu1 %229  ;;  %v226_v17 = vpop.permute.xlu0 %225 }
  0x9a   : > { %v298_v19 = vsel %vm273_vm2, 0.0, %v274_v14  ;;  %v251_v20 = vsel %vm247_vm0, 0.0, %v230_v16  ;;  %v249_v21 = vsel %vm247_vm0, 0.0, %v226_v17 }
  0x9b   : > { %v301_v22 = vmul.f32 %v545_v13, %v298_v19  ;;  %v260_v23 = vsel %vm256_vm1, %v251_v20, 0.0  ;;  %v258_v24 = vsel %vm256_vm1, %v249_v21, 0.0  ;;  %v327_v19 = vld [vmem:[%s550_s30 + $0x38] sm:$0xff] }
  0x9c   : > { %v279_v27 = vrot.slane %v260_v23, 7  ;;  %v275_v28 = vrot.slane %v258_v24, 7 }
  0x9d   : > { %v311_v29 = vadd.f32 %v553_v18, %v301_v22  ;;  %v234_v30 = vpop.permute.xlu1 %233  ;;  %v232_v31 = vpop.permute.xlu0 %231 }
  0x9e   : > { %v280_v32 = vsel %vm273_vm2, %v277_v25, %v279_v27  ;;  %v276_v33 = vsel %vm273_vm2, %v274_v14, %v275_v28  ;;  %v278_v34 = vsel %vm273_vm2, %v275_v28, %v277_v25  ;;  %v253_v35 = vsel %vm247_vm0, 0.0, %v234_v30 }
  0x9f   : > { %v329_v36 = vadd.f32 %v320_v26, %v311_v29  ;;  %v304_v37 = vmul.f32 %v545_v13, %v280_v32  ;;  %v302_v38 = vmul.f32 %v545_v13, %v276_v33  ;;  %v303_v39 = vmul.f32 %v545_v13, %v278_v34 }
  0xa0   : > { %v262_v43 = vsel %vm256_vm1, %v253_v35, 0.0  ;;  %v252_v44 = vsel %vm247_vm0, 0.0, %v232_v31 }
  0xa1   : > { %339 = vst.msk [vmem:[%s566_s6] sm:$0xff] %vm338_vm3, %v329_v36  ;;  %v314_v45 = vadd.f32 %v553_v18, %v304_v37  ;;  %v312_v46 = vadd.f32 %v553_v18, %v302_v38  ;;  %v313_v47 = vadd.f32 %v553_v18, %v303_v39  ;;  %v283_v48 = vrot.slane %v262_v43, 7  ;;  %v238_v49 = vpop.permute.xlu1 %237  ;;  %v236_v50 = vpop.permute.xlu0 %235 }
  0xa2   : > { %v261_v51 = vsel %vm256_vm1, %v252_v44, 0.0  ;;  %v255_v52 = vsel %vm247_vm0, 0.0, %v238_v49  ;;  %v254_v53 = vsel %vm247_vm0, 0.0, %v236_v50 }
  0xa3   : > { %v332_v54 = vadd.f32 %v323_v40, %v314_v45  ;;  %v330_v55 = vadd.f32 %v321_v41, %v312_v46  ;;  %v331_v56 = vadd.f32 %v322_v42, %v313_v47  ;;  %v281_v57 = vrot.slane %v261_v51, 7 }
  0xa4   : > { %v264_v58 = vsel %vm256_vm1, %v255_v52, 0.0  ;;  %v263_v59 = vsel %vm256_vm1, %v254_v53, 0.0 }
  0xa5   : > { %342 = vst.msk [vmem:[%s566_s6 + $0x18] sm:$0xff] %vm338_vm3, %v332_v54  ;;  %340 = vst.msk [vmem:[%s566_s6 + $0x8] sm:$0xff] %vm338_vm3, %v330_v55  ;;  %v282_v60 = vsel %vm273_vm2, %v279_v27, %v281_v57  ;;  %v284_v61 = vsel %vm273_vm2, %v281_v57, %v283_v48  ;;  %v287_v62 = vrot.slane %v264_v58, 7  ;;  %v285_v63 = vrot.slane %v263_v59, 7 }
  0xa6   : > { %341 = vst.msk [vmem:[%s566_s6 + $0x10] sm:$0xff] %vm338_vm3, %v331_v56  ;;  %v305_v0 = vmul.f32 %v545_v13, %v282_v60  ;;  %v306_v1 = vmul.f32 %v545_v13, %v284_v61 }
  0xa7   : > { %v299_v4 = vsel %vm273_vm2, %v287_v62, 0.0  ;;  %v286_v5 = vsel %vm273_vm2, %v283_v48, %v285_v63  ;;  %v288_v6 = vsel %vm273_vm2, %v285_v63, %v287_v62 }
  0xa8   : > { %v315_v7 = vadd.f32 %v553_v18, %v305_v0  ;;  %v316_v8 = vadd.f32 %v553_v18, %v306_v1  ;;  %v309_v9 = vmul.f32 %v545_v13, %v299_v4  ;;  %v307_v10 = vmul.f32 %v545_v13, %v286_v5 }
  0xa9   : > { %v308_v14 = vmul.f32 %v545_v13, %v288_v6 }
  0xaa   : > { %v333_v15 = vadd.f32 %v324_v2, %v315_v7  ;;  %v334_v16 = vadd.f32 %v325_v3, %v316_v8  ;;  %v319_v17 = vadd.f32 %v553_v18, %v309_v9  ;;  %v317_v20 = vadd.f32 %v553_v18, %v307_v10 }
  0xab   : > { %v318_v21 = vadd.f32 %v553_v18, %v308_v14 }
  0xac   : > { %343 = vst.msk [vmem:[%s566_s6 + $0x20] sm:$0xff] %vm338_vm3, %v333_v15  ;;  %344 = vst.msk [vmem:[%s566_s6 + $0x28] sm:$0xff] %vm338_vm3, %v334_v16  ;;  %v337_v22 = vadd.f32 %v328_v11, %v319_v17  ;;  %v335_v23 = vadd.f32 %v326_v12, %v317_v20 }
  0xad   : > { %v336_v24 = vadd.f32 %v327_v19, %v318_v21 }
  0xae   : > { %348 = vst.msk [vmem:[%s566_s6 + $0x40] sm:$0x3] %vm347_vm4, %v337_v22 }
  0xaf   : > { %345 = vst.msk [vmem:[%s566_s6 + $0x30] sm:$0xff] %vm338_vm3, %v335_v23  ;;  %346 = vst.msk [vmem:[%s566_s6 + $0x38] sm:$0xff] %vm338_vm3, %v336_v24 }
  0xb0 PF: > { %s14_s12 = sadd.s32 1, %s489_s12  }
  0xb1   : > { %p11_p1 = scmp.ge.s32.totalorder %s14_s12, 4  }
  0xb3   :  { %13 = sbr.rel (!%p11_p1) target bundleno = 1 (0x1), region = 70 }
  0xba   :  { %370 = vsyncpa [#allocation3], 1 }
  0xbb   :  { %372 = vsyncpa [#allocation3 + $0x1], 1 }

</bundles_post_ra>
